<compile_context>
chip_gen: v7x
topology: tpu7x:2x2x1
jax: 0.10.0
libtpu: 0.0.40
codegen_flags: <defaults>
</compile_context>

<pallas_src>
import jax
import jax.numpy as jnp
from jax.experimental import pallas as pl
from jax.experimental.pallas import tpu as pltpu


# -----------------------------------------------------------------------------
# Fused Pallas kernel: whole LinearDecoder forward on one [TM, in_dim] row tile.
# -----------------------------------------------------------------------------
def _round_up(x, m):
    return ((x + m - 1) // m) * m


def _make_linear_decoder_kernel(n_res_layers, matmul_dtype):
    """refs = [x, w1, b1, w2, b2, w3, b3, (wa_l, wb_l)*n_res, out]."""

    def mm(a, w):
        # Degenerate K == 1 contraction -> pure lane broadcast (skip padded MXU pass).
        if a.shape[-1] == 1:
            return a * w                      # [TM,1] * [1,N] -> [TM,N], f32
        return jnp.dot(a.astype(matmul_dtype), w.astype(matmul_dtype),
                       preferred_element_type=jnp.float32)

    def kernel(*refs):
        x_ref = refs[0]
        o_ref = refs[-1]
        wr = refs[1:-1]

        w1, b1 = wr[0][...], wr[1][...]
        w2, b2 = wr[2][...], wr[3][...]
        w3, b3 = wr[4][...], wr[5][...]

        x = x_ref[...]
        h = jnp.maximum(mm(x, w1) + b1, 0.0)          # Linear(in_dim, h_dim) + ReLU
        h = jnp.maximum(mm(h, w2) + b2, 0.0)          # Linear(h_dim, h_dim//2) + ReLU
        h = mm(h, w3) + b3                            # Linear(h_dim//2, 1)

        # LinearResidualStack: residual adds fused in-kernel (no HBM round-trips).
        for l in range(n_res_layers):
            wa = wr[6 + 2 * l][...]
            wb = wr[7 + 2 * l][...]
            r = jnp.maximum(h, 0.0)
            r = jnp.maximum(mm(r, wa), 0.0)
            r = mm(r, wb)
            h = h + r
        o_ref[...] = jnp.maximum(h, 0.0)              # final ReLU of the stack

    return kernel


def linear_decoder_forward(params, x, *, tile_m=128, matmul_dtype=jnp.float32):
    """Pallas forward. x: [..., in_dim] -> [..., 1] (float32)."""
    in_dim = params["w1"].shape[0]
    lead = x.shape[:-1]
    x2 = x.reshape(-1, in_dim).astype(jnp.float32)
    M = x2.shape[0]

    TM = min(tile_m, _round_up(M, 8))                 # sublane-aligned row tile
    Mp = _round_up(M, TM)
    if Mp != M:
        x2 = jnp.pad(x2, ((0, Mp - M), (0, 0)))       # zero-pad rows, sliced off below

    n_res = len(params["res"])
    weights = [params["w1"], params["b1"].reshape(1, -1),
               params["w2"], params["b2"].reshape(1, -1),
               params["w3"], params["b3"].reshape(1, -1)]
    for wa, wb in params["res"]:
        weights += [wa, wb]

    in_specs = [pl.BlockSpec((TM, in_dim), lambda i: (i, 0))]
    for wgt in weights:
        # Constant block index -> weight stays resident in VMEM across grid steps.
        in_specs.append(pl.BlockSpec(wgt.shape, lambda i: (0, 0)))

    out = pl.pallas_call(
        _make_linear_decoder_kernel(n_res, matmul_dtype),
        out_shape=jax.ShapeDtypeStruct((Mp, 1), jnp.float32),
        grid=(Mp // TM,),
        in_specs=in_specs,
        out_specs=pl.BlockSpec((TM, 1), lambda i: (i, 0)),
        compiler_params=pltpu.CompilerParams(
            dimension_semantics=("parallel",)),       # rows independent -> v7x 2-TC shard
    )(x2, *weights)

    return out[:M].reshape(*lead, 1)


# -----------------------------------------------------------------------------
# Pure-JAX reference (same math) for correctness checking.
# -----------------------------------------------------------------------------
def linear_decoder_ref(params, x):
    in_dim = params["w1"].shape[0]
    lead = x.shape[:-1]
    h = x.reshape(-1, in_dim).astype(jnp.float32)
    h = jax.nn.relu(h @ params["w1"] + params["b1"])
    h = jax.nn.relu(h @ params["w2"] + params["b2"])
    h = h @ params["w3"] + params["b3"]
    for wa, wb in params["res"]:
        r = jax.nn.relu(h)
        r = jax.nn.relu(r @ wa)
        r = r @ wb
        h = h + r
    h = jax.nn.relu(h)
    return h.reshape(*lead, 1)


# -----------------------------------------------------------------------------
# Deterministic parameter init (PyTorch nn.Linear-style uniform, no checkpoint).
# -----------------------------------------------------------------------------
def init_params(key, in_dim, h_dim, res_h_dim, n_res_layers):
    h2 = h_dim // 2
    keys = iter(jax.random.split(key, 8 + 4 * n_res_layers))

    def linear(fan_in, fan_out, bias=True):
        bound = 1.0 / (fan_in ** 0.5)
        w = jax.random.uniform(next(keys), (fan_in, fan_out), jnp.float32, -bound, bound)
        b = (jax.random.uniform(next(keys), (fan_out,), jnp.float32, -bound, bound)
             if bias else None)
        return w, b

    p = {}
    p["w1"], p["b1"] = linear(in_dim, h_dim)
    p["w2"], p["b2"] = linear(h_dim, h2)
    p["w3"], p["b3"] = linear(h2, 1)
    res = []
    for _ in range(n_res_layers):
        wa, _ = linear(h2, res_h_dim, bias=False)     # bias-free, VQ-VAE convention
        wb, _ = linear(res_h_dim, h2, bias=False)
        res.append((wa, wb))
    p["res"] = res
    return p


# -----------------------------------------------------------------------------
if __name__ == "__main__":
    in_dim = 32
    h_dim = 2          # h_dim // 2 == 1 so the literal Sequential composition is valid
    res_h_dim = 16
    n_res_layers = 3
    B, S = 2, 100      # x: [B, S, in_dim] -> M = 200 rows (exercises M tiling + padding)

    root = jax.random.PRNGKey(0)
    kp, kx = jax.random.split(root)
    params = init_params(kp, in_dim, h_dim, res_h_dim, n_res_layers)
    x = jax.random.normal(kx, (B, S, in_dim), jnp.float32)

    # f32-operand path: must match the pure-JAX reference tightly.
    y = jax.block_until_ready(linear_decoder_forward(params, x))
    y_ref = linear_decoder_ref(params, x)
    assert y.shape == (B, S, 1), y.shape
    assert bool(jnp.all(jnp.isfinite(y)))
    assert bool(jnp.allclose(y, y_ref, rtol=1e-5, atol=1e-5)), \
        float(jnp.max(jnp.abs(y - y_ref)))

    # bf16 MXU-operand path (v6e/v7x recommendation), f32 accumulation preserved.
    y_bf16 = jax.block_until_ready(
        linear_decoder_forward(params, x, matmul_dtype=jnp.bfloat16))
    assert y_bf16.shape == (B, S, 1)
    assert bool(jnp.all(jnp.isfinite(y_bf16)))
    assert bool(jnp.allclose(y_bf16, y_ref, rtol=5e-2, atol=1e-1))

    print("KERNEL_OK")
</pallas_src>

<mosaic_0001>
module attributes {stable_mosaic.version = 11 : i64} {
  func.func @kernel(%arg0: i32, %arg1: memref<128x32xf32, #tpu.memory_space<vmem>>, %arg2: memref<32x2xf32, #tpu.memory_space<vmem>>, %arg3: memref<1x2xf32, #tpu.memory_space<vmem>>, %arg4: memref<2x1xf32, #tpu.memory_space<vmem>>, %arg5: memref<1x1xf32, #tpu.memory_space<vmem>>, %arg6: memref<1x1xf32, #tpu.memory_space<vmem>>, %arg7: memref<1x1xf32, #tpu.memory_space<vmem>>, %arg8: memref<1x16xf32, #tpu.memory_space<vmem>>, %arg9: memref<16x1xf32, #tpu.memory_space<vmem>>, %arg10: memref<1x16xf32, #tpu.memory_space<vmem>>, %arg11: memref<16x1xf32, #tpu.memory_space<vmem>>, %arg12: memref<1x16xf32, #tpu.memory_space<vmem>>, %arg13: memref<16x1xf32, #tpu.memory_space<vmem>>, %arg14: memref<128x1xf32, #tpu.memory_space<vmem>>) attributes {dimension_semantics = [#tpu.dimension_semantics<parallel>], iteration_bounds = array<i64: 2>, scalar_prefetch = 0 : i64, scratch_operands = 0 : i64, tpu.core_type = #tpu.core_type<tc>, window_params = [{transform_indices = @transform_0, window_bounds = array<i64: 128, 32>}, {pipeline_mode = #tpu.pipeline_mode<synchronous>, transform_indices = @transform_1, window_bounds = array<i64: 32, 2>}, {pipeline_mode = #tpu.pipeline_mode<synchronous>, transform_indices = @transform_2, window_bounds = array<i64: 1, 2>}, {pipeline_mode = #tpu.pipeline_mode<synchronous>, transform_indices = @transform_3, window_bounds = array<i64: 2, 1>}, {pipeline_mode = #tpu.pipeline_mode<synchronous>, transform_indices = @transform_4, window_bounds = array<i64: 1, 1>}, {pipeline_mode = #tpu.pipeline_mode<synchronous>, transform_indices = @transform_5, window_bounds = array<i64: 1, 1>}, {pipeline_mode = #tpu.pipeline_mode<synchronous>, transform_indices = @transform_6, window_bounds = array<i64: 1, 1>}, {pipeline_mode = #tpu.pipeline_mode<synchronous>, transform_indices = @transform_7, window_bounds = array<i64: 1, 16>}, {pipeline_mode = #tpu.pipeline_mode<synchronous>, transform_indices = @transform_8, window_bounds = array<i64: 16, 1>}, {pipeline_mode = #tpu.pipeline_mode<synchronous>, transform_indices = @transform_9, window_bounds = array<i64: 1, 16>}, {pipeline_mode = #tpu.pipeline_mode<synchronous>, transform_indices = @transform_10, window_bounds = array<i64: 16, 1>}, {pipeline_mode = #tpu.pipeline_mode<synchronous>, transform_indices = @transform_11, window_bounds = array<i64: 1, 16>}, {pipeline_mode = #tpu.pipeline_mode<synchronous>, transform_indices = @transform_12, window_bounds = array<i64: 16, 1>}, {transform_indices = @transform_13, window_bounds = array<i64: 128, 1>}]} {
    %c0 = arith.constant 0 : index
    %c0_0 = arith.constant 0 : index
    %0 = vector.load %arg2[%c0, %c0_0] : memref<32x2xf32, #tpu.memory_space<vmem>>, vector<32x2xf32>
    %c0_1 = arith.constant 0 : index
    %c0_2 = arith.constant 0 : index
    %1 = vector.load %arg3[%c0_1, %c0_2] : memref<1x2xf32, #tpu.memory_space<vmem>>, vector<1x2xf32>
    %c0_3 = arith.constant 0 : index
    %c0_4 = arith.constant 0 : index
    %2 = vector.load %arg4[%c0_3, %c0_4] : memref<2x1xf32, #tpu.memory_space<vmem>>, vector<2x1xf32>
    %c0_5 = arith.constant 0 : index
    %c0_6 = arith.constant 0 : index
    %3 = vector.load %arg5[%c0_5, %c0_6] : memref<1x1xf32, #tpu.memory_space<vmem>>, vector<1x1xf32>
    %c0_7 = arith.constant 0 : index
    %c0_8 = arith.constant 0 : index
    %4 = vector.load %arg6[%c0_7, %c0_8] : memref<1x1xf32, #tpu.memory_space<vmem>>, vector<1x1xf32>
    %c0_9 = arith.constant 0 : index
    %c0_10 = arith.constant 0 : index
    %5 = vector.load %arg7[%c0_9, %c0_10] : memref<1x1xf32, #tpu.memory_space<vmem>>, vector<1x1xf32>
    %c0_11 = arith.constant 0 : index
    %c0_12 = arith.constant 0 : index
    %6 = vector.load %arg1[%c0_11, %c0_12] : memref<128x32xf32, #tpu.memory_space<vmem>>, vector<128x32xf32>
    %cst = arith.constant dense<0.000000e+00> : vector<128x2xf32>
    %7 = tpu.matmul %6, %0, %cst {dimension_numbers = #tpu.dot_dimension_numbers<[1], [0], [0], [1], [0, 0, 1, 1], [], []>} : vector<128x32xf32>, vector<32x2xf32>, vector<128x2xf32> -> vector<128x2xf32>
    %8 = vector.broadcast %1 : vector<1x2xf32> to vector<128x2xf32>
    %9 = arith.addf %7, %8 : vector<128x2xf32>
    %cst_13 = arith.constant 0.000000e+00 : f32
    %10 = vector.broadcast %cst_13 : f32 to vector<128x2xf32>
    %11 = arith.maximumf %9, %10 : vector<128x2xf32>
    %cst_14 = arith.constant dense<0.000000e+00> : vector<128x1xf32>
    %12 = tpu.matmul %11, %2, %cst_14 {dimension_numbers = #tpu.dot_dimension_numbers<[1], [0], [0], [1], [0, 0, 1, 1], [], []>} : vector<128x2xf32>, vector<2x1xf32>, vector<128x1xf32> -> vector<128x1xf32>
    %13 = vector.broadcast %3 : vector<1x1xf32> to vector<128x1xf32>
    %14 = arith.addf %12, %13 : vector<128x1xf32>
    %cst_15 = arith.constant 0.000000e+00 : f32
    %15 = vector.broadcast %cst_15 : f32 to vector<128x1xf32>
    %16 = arith.maximumf %14, %15 : vector<128x1xf32>
    %17 = vector.broadcast %4 : vector<1x1xf32> to vector<128x1xf32>
    %18 = arith.mulf %16, %17 : vector<128x1xf32>
    %19 = vector.broadcast %5 : vector<1x1xf32> to vector<128x1xf32>
    %20 = arith.addf %18, %19 : vector<128x1xf32>
    %c0_16 = arith.constant 0 : index
    %c0_17 = arith.constant 0 : index
    %21 = vector.load %arg8[%c0_16, %c0_17] : memref<1x16xf32, #tpu.memory_space<vmem>>, vector<1x16xf32>
    %c0_18 = arith.constant 0 : index
    %c0_19 = arith.constant 0 : index
    %22 = vector.load %arg9[%c0_18, %c0_19] : memref<16x1xf32, #tpu.memory_space<vmem>>, vector<16x1xf32>
    %cst_20 = arith.constant 0.000000e+00 : f32
    %23 = vector.broadcast %cst_20 : f32 to vector<128x1xf32>
    %24 = arith.maximumf %20, %23 : vector<128x1xf32>
    %25 = vector.broadcast %24 : vector<128x1xf32> to vector<128x16xf32>
    %26 = vector.broadcast %21 : vector<1x16xf32> to vector<128x16xf32>
    %27 = arith.mulf %25, %26 : vector<128x16xf32>
    %cst_21 = arith.constant 0.000000e+00 : f32
    %28 = vector.broadcast %cst_21 : f32 to vector<128x16xf32>
    %29 = arith.maximumf %27, %28 : vector<128x16xf32>
    %cst_22 = arith.constant dense<0.000000e+00> : vector<128x1xf32>
    %30 = tpu.matmul %29, %22, %cst_22 {dimension_numbers = #tpu.dot_dimension_numbers<[1], [0], [0], [1], [0, 0, 1, 1], [], []>} : vector<128x16xf32>, vector<16x1xf32>, vector<128x1xf32> -> vector<128x1xf32>
    %31 = arith.addf %20, %30 : vector<128x1xf32>
    %c0_23 = arith.constant 0 : index
    %c0_24 = arith.constant 0 : index
    %32 = vector.load %arg10[%c0_23, %c0_24] : memref<1x16xf32, #tpu.memory_space<vmem>>, vector<1x16xf32>
    %c0_25 = arith.constant 0 : index
    %c0_26 = arith.constant 0 : index
    %33 = vector.load %arg11[%c0_25, %c0_26] : memref<16x1xf32, #tpu.memory_space<vmem>>, vector<16x1xf32>
    %cst_27 = arith.constant 0.000000e+00 : f32
    %34 = vector.broadcast %cst_27 : f32 to vector<128x1xf32>
    %35 = arith.maximumf %31, %34 : vector<128x1xf32>
    %36 = vector.broadcast %35 : vector<128x1xf32> to vector<128x16xf32>
    %37 = vector.broadcast %32 : vector<1x16xf32> to vector<128x16xf32>
    %38 = arith.mulf %36, %37 : vector<128x16xf32>
    %cst_28 = arith.constant 0.000000e+00 : f32
    %39 = vector.broadcast %cst_28 : f32 to vector<128x16xf32>
    %40 = arith.maximumf %38, %39 : vector<128x16xf32>
    %cst_29 = arith.constant dense<0.000000e+00> : vector<128x1xf32>
    %41 = tpu.matmul %40, %33, %cst_29 {dimension_numbers = #tpu.dot_dimension_numbers<[1], [0], [0], [1], [0, 0, 1, 1], [], []>} : vector<128x16xf32>, vector<16x1xf32>, vector<128x1xf32> -> vector<128x1xf32>
    %42 = arith.addf %31, %41 : vector<128x1xf32>
    %c0_30 = arith.constant 0 : index
    %c0_31 = arith.constant 0 : index
    %43 = vector.load %arg12[%c0_30, %c0_31] : memref<1x16xf32, #tpu.memory_space<vmem>>, vector<1x16xf32>
    %c0_32 = arith.constant 0 : index
    %c0_33 = arith.constant 0 : index
    %44 = vector.load %arg13[%c0_32, %c0_33] : memref<16x1xf32, #tpu.memory_space<vmem>>, vector<16x1xf32>
    %cst_34 = arith.constant 0.000000e+00 : f32
    %45 = vector.broadcast %cst_34 : f32 to vector<128x1xf32>
    %46 = arith.maximumf %42, %45 : vector<128x1xf32>
    %47 = vector.broadcast %46 : vector<128x1xf32> to vector<128x16xf32>
    %48 = vector.broadcast %43 : vector<1x16xf32> to vector<128x16xf32>
    %49 = arith.mulf %47, %48 : vector<128x16xf32>
    %cst_35 = arith.constant 0.000000e+00 : f32
    %50 = vector.broadcast %cst_35 : f32 to vector<128x16xf32>
    %51 = arith.maximumf %49, %50 : vector<128x16xf32>
    %cst_36 = arith.constant dense<0.000000e+00> : vector<128x1xf32>
    %52 = tpu.matmul %51, %44, %cst_36 {dimension_numbers = #tpu.dot_dimension_numbers<[1], [0], [0], [1], [0, 0, 1, 1], [], []>} : vector<128x16xf32>, vector<16x1xf32>, vector<128x1xf32> -> vector<128x1xf32>
    %53 = arith.addf %42, %52 : vector<128x1xf32>
    %cst_37 = arith.constant 0.000000e+00 : f32
    %54 = vector.broadcast %cst_37 : f32 to vector<128x1xf32>
    %55 = arith.maximumf %53, %54 : vector<128x1xf32>
    %c0_38 = arith.constant 0 : index
    %c0_39 = arith.constant 0 : index
    %56 = vector.load %arg14[%c0_38, %c0_39] : memref<128x1xf32, #tpu.memory_space<vmem>>, vector<128x1xf32>
    tpu.vector_store %arg14[%c0_38, %c0_39], %55 {strides = array<i32>} : memref<128x1xf32, #tpu.memory_space<vmem>>, vector<128x1xf32>,
    return
  }
  func.func @transform_0(%arg0: i32) -> (i32, i32) {
    %c0_i32 = arith.constant 0 : i32
    %c0_i32_0 = arith.constant 0 : i32
    return %arg0, %c0_i32 : i32, i32
  }
  func.func @transform_1(%arg0: i32) -> (i32, i32) {
    %c0_i32 = arith.constant 0 : i32
    %c0_i32_0 = arith.constant 0 : i32
    %c0_i32_1 = arith.constant 0 : i32
    return %c0_i32, %c0_i32_0 : i32, i32
  }
  func.func @transform_2(%arg0: i32) -> (i32, i32) {
    %c0_i32 = arith.constant 0 : i32
    %c0_i32_0 = arith.constant 0 : i32
    %c0_i32_1 = arith.constant 0 : i32
    return %c0_i32, %c0_i32_0 : i32, i32
  }
  func.func @transform_3(%arg0: i32) -> (i32, i32) {
    %c0_i32 = arith.constant 0 : i32
    %c0_i32_0 = arith.constant 0 : i32
    %c0_i32_1 = arith.constant 0 : i32
    return %c0_i32, %c0_i32_0 : i32, i32
  }
  func.func @transform_4(%arg0: i32) -> (i32, i32) {
    %c0_i32 = arith.constant 0 : i32
    %c0_i32_0 = arith.constant 0 : i32
    %c0_i32_1 = arith.constant 0 : i32
    return %c0_i32, %c0_i32_0 : i32, i32
  }
  func.func @transform_5(%arg0: i32) -> (i32, i32) {
    %c0_i32 = arith.constant 0 : i32
    %c0_i32_0 = arith.constant 0 : i32
    %c0_i32_1 = arith.constant 0 : i32
    return %c0_i32, %c0_i32_0 : i32, i32
  }
  func.func @transform_6(%arg0: i32) -> (i32, i32) {
    %c0_i32 = arith.constant 0 : i32
    %c0_i32_0 = arith.constant 0 : i32
    %c0_i32_1 = arith.constant 0 : i32
    return %c0_i32, %c0_i32_0 : i32, i32
  }
  func.func @transform_7(%arg0: i32) -> (i32, i32) {
    %c0_i32 = arith.constant 0 : i32
    %c0_i32_0 = arith.constant 0 : i32
    %c0_i32_1 = arith.constant 0 : i32
    return %c0_i32, %c0_i32_0 : i32, i32
  }
  func.func @transform_8(%arg0: i32) -> (i32, i32) {
    %c0_i32 = arith.constant 0 : i32
    %c0_i32_0 = arith.constant 0 : i32
    %c0_i32_1 = arith.constant 0 : i32
    return %c0_i32, %c0_i32_0 : i32, i32
  }
  func.func @transform_9(%arg0: i32) -> (i32, i32) {
    %c0_i32 = arith.constant 0 : i32
    %c0_i32_0 = arith.constant 0 : i32
    %c0_i32_1 = arith.constant 0 : i32
    return %c0_i32, %c0_i32_0 : i32, i32
  }
  func.func @transform_10(%arg0: i32) -> (i32, i32) {
    %c0_i32 = arith.constant 0 : i32
    %c0_i32_0 = arith.constant 0 : i32
    %c0_i32_1 = arith.constant 0 : i32
    return %c0_i32, %c0_i32_0 : i32, i32
  }
  func.func @transform_11(%arg0: i32) -> (i32, i32) {
    %c0_i32 = arith.constant 0 : i32
    %c0_i32_0 = arith.constant 0 : i32
    %c0_i32_1 = arith.constant 0 : i32
    return %c0_i32, %c0_i32_0 : i32, i32
  }
  func.func @transform_12(%arg0: i32) -> (i32, i32) {
    %c0_i32 = arith.constant 0 : i32
    %c0_i32_0 = arith.constant 0 : i32
    %c0_i32_1 = arith.constant 0 : i32
    return %c0_i32, %c0_i32_0 : i32, i32
  }
  func.func @transform_13(%arg0: i32) -> (i32, i32) {
    %c0_i32 = arith.constant 0 : i32
    %c0_i32_0 = arith.constant 0 : i32
    return %arg0, %c0_i32 : i32, i32
  }
}

</mosaic_0001>

<bundles_post_ra>
// kernel: tpu_custom_call.1
= control target key start
LH: loop header
LB: loop body
LE: loop exit
PB: predicated region body
PF: predicated region fallthrough
CT: control target
= control target key end

     0   :  { %s2536_s14 = smov 0   ;;  %s2987_s0 = inlined_call_operand.vmem [shape: f32[256,32], index: 0, kind: input, shape index: {}]   ;;  %s2988_s1 = inlined_call_operand.vmem [shape: f32[32,2], index: 1, kind: input, shape index: {}]   ;;  %s2989_s2 = inlined_call_operand.vmem [shape: f32[1,2], index: 2, kind: input, shape index: {}]   ;;  %s2990_s3 = inlined_call_operand.vmem [shape: f32[2,1], index: 3, kind: input, shape index: {}]   ;;  %s2991_s4 = inlined_call_operand.<no memory space> [shape: f32[1,1], index: 4, kind: input, shape index: {}]   ;;  %s2992_s7 = inlined_call_operand.vmem [shape: f32[1,16], index: 7, kind: input, shape index: {}]   ;;  %s2993_s8 = inlined_call_operand.vmem [shape: f32[16,1], index: 8, kind: input, shape index: {}]   ;;  %s2994_s9 = inlined_call_operand.vmem [shape: f32[1,16], index: 9, kind: input, shape index: {}]   ;;  %s2995_s10 = inlined_call_operand.vmem [shape: f32[16,1], index: 10, kind: input, shape index: {}]   ;;  %s2996_s11 = inlined_call_operand.vmem [shape: f32[1,16], index: 11, kind: input, shape index: {}]   ;;  %s2997_s12 = inlined_call_operand.vmem [shape: f32[16,1], index: 12, kind: input, shape index: {}]   ;;  %s2998_s13 = inlined_call_operand.vmem [shape: f32[256,1], index: 13, kind: output, shape index: {}]   ;;  %s2999_s5 = inlined_call_operand.<no memory space> [shape: f32[1,1], index: 5, kind: input, shape index: {}]   ;;  %s3000_s6 = inlined_call_operand.<no memory space> [shape: f32[1,1], index: 6, kind: input, shape index: {}]  }
   0x1   :  { %v18_v0 = vstv %s2991_s4  ;;  %v20_v1 = vstv %s2999_s5  ;;  %v22_v2 = vstv %s3000_s6 }
   0x2   :  { %19 = vst [vmem:[#allocation2] sm:$0x1] %v18_v0  ;;  %21 = vst [vmem:[#allocation3] sm:$0x1] %v20_v1 }
   0x3   :  { %23 = vst [vmem:[#allocation4] sm:$0x1] %v22_v2 }
   0x4 LB: > { %s2083_s4 = sadd.s32 4294967295, %s2454_s14   ;;  %p2087_p0 = scmp.ge.s32.totalorder %s2454_s14, 1  ;;  %s2454_s14 = sphi %s2536_s14, %s29_s14  }
   0x5   : > { %p394_p1 = scmp.lt.s32.totalorder %s2454_s14, 3 }
   0x7   : > { %p395_p2 = pnand %p2087_p0, %p394_p1 }
   0x8   : > { %v450_v3 = vld [vmem:[%s2988_s1] sm:$0xff] (!%p395_p2)  ;;  %v451_v4 = vld [vmem:[%s2988_s1 + $0x8] sm:$0xff] (!%p395_p2)  ;;  %v452_v5 = vld [vmem:[%s2988_s1 + $0x10] sm:$0xff] (!%p395_p2)  ;;  %s2088_s19 = sshll.u32 (!%p395_p2), %s2083_s4, 4  ;;  %vm746_vm0 = vcmask (!%p395_p2), 1041408   ;;  %vm481_vm1 = vcmask (!%p395_p2), 261120  }
   0x9   : > { %398 = sbr.rel (%p395_p2) target bundleno = 1544 (0x608), region = 72  ;;  %v2415_v6 = vpack.c.bf16 (!%p395_p2), %v451_v4, %v450_v3  ;;  %v453_v7 = vld [vmem:[%s2988_s1 + $0x18] sm:$0xff] (!%p395_p2)  ;;  %p439_p3 = scmp.lt.s32.totalorder (!%p395_p2), %s2088_s19, 31  ;;  %v455_v8 = vld [vmem:[%s2990_s3] sm:$0x3] (!%p395_p2)  ;;  %vm697_vm2 = vcmask (!%p395_p2), 15360  }
   0xa   : > { %v2419_v9 = vpack.c.bf16 (!%p395_p2), %v453_v7, %v452_v5  ;;  %2435 = vmatprep.subr.msk.mxu1 (!%p395_p2), %vm746_vm0, %v455_v8  ;;  %v2092_v26 = vld [vmem:[%s2989_s2] ss:$0 sm:$0xff] (!%p395_p2)  ;;  %vm1092_vm3 = vcmask (!%p395_p2), 130048   ;;  %vm2010_vm4 = vcmask (!%p395_p2), 7168  }
   0xb   : > { %2416 = vmatprep.subr.bf16.mxu0 (!%p395_p2), %v2415_v6  ;;  %2436 = vmatpush3.msk.msra.mxu1 (!%p395_p2), %vm746_vm0, %v455_v8 }
   0xc   : > { %2418 = vmatpush3.bf16.msra.mxu0 (!%p395_p2), %v2415_v6 }
   0xd   : > { %2420 = vmatprep.subr.bf16.mxu0 (!%p395_p2), %v2419_v9 }
  0x10   : > { %s3002_s19 = smov (!%p439_p3, %s2088_s19), 31  ;;  %2422 = vmatpush3.bf16.msra.mxu0 %v2419_v9 }
  0x11   : > { %s2089_s24 = sshll.u32 %s3002_s19, 3  ;;  %2305 = vmatprep.subr.msk.mxu0 %vm746_vm0, %v455_v8 }
  0x12   : > { %s2569_s27 = scalar_lea.vmem %s2987_s0, %s2089_s24  ;;  %s2935_s6 = scalar_lea.vmem %s2998_s13, %s2089_s24 }
  0x13   : > { %v459_v10 = vld [vmem:[%s2569_s27] sm:$0xff]  ;;  %v460_v11 = vld [vmem:[%s2569_s27 + $0x8] sm:$0xff]  ;;  %v461_v12 = vld [vmem:[%s2569_s27 + $0x10] sm:$0xff] }
  0x14   : > { %2281 = vmatprep.mubr.msk.f32.mxu0 %vm481_vm1, %v459_v10  ;;  %v462_v13 = vld [vmem:[%s2569_s27 + $0x18] sm:$0xff]  ;;  %v463_v14 = vld [vmem:[%s2569_s27 + $0x20] sm:$0xff]  ;;  %v464_v15 = vld [vmem:[%s2569_s27 + $0x28] sm:$0xff] }
  0x15   : > { %2282 = vmatmul.mubr.msk.f32.vlgmr.msra.gmra.mrb[0].mxu0 %vm481_vm1, %v460_v11  ;;  %v465_v16 = vld [vmem:[%s2569_s27 + $0x30] sm:$0xff]  ;;  %v466_v17 = vld [vmem:[%s2569_s27 + $0x38] sm:$0xff]  ;;  %v467_v18 = vld [vmem:[%s2569_s27 + $0x40] sm:$0xff]  ;;  %v2456_v11 = vmov 0  }
  0x16   : > { %2284 = vmatprep.mubr.msk.f32.mxu0 %vm481_vm1, %v461_v12  ;;  %2306 = vmatpush3.msk.msra.mxu0 %vm746_vm0, %v455_v8  ;;  %v468_v19 = vld [vmem:[%s2569_s27 + $0x48] sm:$0xff]  ;;  %v469_v20 = vld [vmem:[%s2569_s27 + $0x50] sm:$0xff]  ;;  %v470_v21 = vld [vmem:[%s2569_s27 + $0x58] sm:$0xff] }
  0x17   : > { %v471_v22 = vld [vmem:[%s2569_s27 + $0x60] sm:$0xff]  ;;  %v472_v23 = vld [vmem:[%s2569_s27 + $0x68] sm:$0xff]  ;;  %v473_v24 = vld [vmem:[%s2569_s27 + $0x70] sm:$0xff]  ;;  %2446 = vset.pattern.permute.xlu0 %v2456_v11  ;;  %2447 = vset.pattern.permute.xlu1 %v2456_v11 }
  0x18   : > { %v474_v25 = vld [vmem:[%s2569_s27 + $0x78] sm:$0xff]  ;;  %v956_v12 = vld [vmem:[%s2993_s8] sm:$0xff] }
  0x19   : > { %2285 = vmatmul.mubr.msk.f32.gmra.mrb[2].mxu0 %vm481_vm1, %v462_v13  ;;  %v957_v13 = vld [vmem:[%s2993_s8 + $0x8] sm:$0xff] }
  0x1a   : > { %2287 = vmatprep.mubr.msk.f32.mxu0 %vm481_vm1, %v463_v14  ;;  %v2423_v14 = vpack.c.bf16 %v957_v13, %v956_v12 }
  0x1c   : > { %2424 = vmatprep.subr.bf16.mxu1 %v2423_v14 }
  0x1d   : > { %2288 = vmatmul.mubr.msk.f32.gmra.mrb[4].mxu0 %vm481_vm1, %v464_v15  ;;  %v2630_v15 = vld [vmem:[#allocation2] ss:$0 sm:$0xff] }
  0x1e   : > { %2290 = vmatprep.mubr.msk.f32.mxu0 %vm481_vm1, %v465_v16 }
  0x21   : > { %2291 = vmatmul.mubr.msk.f32.gmra.mrb[6].mxu0 %vm481_vm1, %v466_v17 }
  0x22   : > { %2293 = vmatprep.mubr.msk.f32.mxu0 %vm481_vm1, %v467_v18 }
  0x25   : > { %2294 = vmatmul.mubr.msk.f32.gmra.mrb[8].mxu0 %vm481_vm1, %v468_v19 }
  0x26   : > { %2296 = vmatprep.mubr.msk.f32.mxu0 %vm481_vm1, %v469_v20  ;;  %v2634_v20 = vld [vmem:[#allocation3] ss:$0 sm:$0xff] }
  0x29   : > { %2297 = vmatmul.mubr.msk.f32.gmra.mrb[10].mxu0 %vm481_vm1, %v470_v21 }
  0x2a   : > { %2299 = vmatprep.mubr.msk.f32.mxu0 %vm481_vm1, %v471_v22 }
  0x2d   : > { %2300 = vmatmul.mubr.msk.f32.gmra.mrb[12].mxu0 %vm481_vm1, %v472_v23 }
  0x2e   : > { %2302 = vmatprep.mubr.msk.f32.mxu0 %vm481_vm1, %v473_v24  ;;  %v2636_v24 = vld [vmem:[#allocation4] ss:$0 sm:$0xff] }
  0x31   : > { %2303 = vmatmul.mubr.msk.f32.gmra.mrb[14].mxu0 %vm481_vm1, %v474_v25 }
  0xe8   : > { %v2283_v27 = vpop.f32.mrb[0].mxu0 }
  0xe9   : > { %v602_v28 = vadd.f32 %v2283_v27, %v2092_v26  ;;  %v596_v29 = vpop.f32.mrb[1].mxu0 }
  0xea   : > { %v597_v30 = vadd.f32 %v2092_v26, %v596_v29 }
  0xeb   : > { %v676_v33 = vmax.f32 %v602_v28, 0.0 }
  0xec   : > { %v675_v31 = vmax.f32 %v597_v30, 0.0  ;;  %v2286_v32 = vpop.f32.mrb[2].mxu0 }
  0xed   : > { %v612_v34 = vadd.f32 %v2286_v32, %v2092_v26  ;;  %v606_v35 = vpop.f32.mrb[3].mxu0 }
  0xee   : > { %v607_v36 = vadd.f32 %v2092_v26, %v606_v35  ;;  %2307 = vmatprep.mubr.msk.f32.mxu0 %vm697_vm2, %v675_v31 }
  0xef   : > { %2308 = vmatmul.mubr.msk.f32.vlgmr.msra.gmra.mrb[16].mxu0 %vm697_vm2, %v676_v33  ;;  %v678_v39 = vmax.f32 %v612_v34, 0.0 }
  0xf0   : > { %v677_v37 = vmax.f32 %v607_v36, 0.0  ;;  %v2289_v38 = vpop.f32.mrb[4].mxu0 }
  0xf1   : > { %v622_v40 = vadd.f32 %v2289_v38, %v2092_v26  ;;  %v616_v41 = vpop.f32.mrb[5].mxu0 }
  0xf2   : > { %v617_v42 = vadd.f32 %v2092_v26, %v616_v41  ;;  %2310 = vmatprep.mubr.msk.f32.mxu0 %vm697_vm2, %v677_v37 }
  0xf3   : > { %v680_v43 = vmax.f32 %v622_v40, 0.0  ;;  %2311 = vmatmul.mubr.msk.f32.gmra.mrb[18].mxu0 %vm697_vm2, %v678_v39 }
  0xf4   : > { %v679_v44 = vmax.f32 %v617_v42, 0.0  ;;  %v2292_v45 = vpop.f32.mrb[6].mxu0 }
  0xf5   : > { %v632_v46 = vadd.f32 %v2292_v45, %v2092_v26  ;;  %v626_v47 = vpop.f32.mrb[7].mxu0 }
  0xf6   : > { %v627_v48 = vadd.f32 %v2092_v26, %v626_v47  ;;  %2313 = vmatprep.mubr.msk.f32.mxu0 %vm697_vm2, %v679_v44 }
  0xf7   : > { %v682_v49 = vmax.f32 %v632_v46, 0.0  ;;  %2314 = vmatmul.mubr.msk.f32.gmra.mrb[20].mxu0 %vm697_vm2, %v680_v43 }
  0xf8   : > { %v681_v50 = vmax.f32 %v627_v48, 0.0  ;;  %v2295_v51 = vpop.f32.mrb[8].mxu0 }
  0xf9   : > { %v642_v52 = vadd.f32 %v2295_v51, %v2092_v26  ;;  %v636_v53 = vpop.f32.mrb[9].mxu0 }
  0xfa   : > { %v637_v54 = vadd.f32 %v2092_v26, %v636_v53  ;;  %2316 = vmatprep.mubr.msk.f32.mxu1 %vm697_vm2, %v681_v50 }
  0xfb   : > { %v684_v55 = vmax.f32 %v642_v52, 0.0  ;;  %2317 = vmatmul.mubr.msk.f32.vlgmr.msra.gmra.mrb[0].mxu1 %vm697_vm2, %v682_v49 }
  0xfc   : > { %v683_v56 = vmax.f32 %v637_v54, 0.0  ;;  %v2298_v57 = vpop.f32.mrb[10].mxu0  ;;  %2426 = vmatpush3.bf16.msra.mxu1 %v2423_v14 }
  0xfd   : > { %v652_v58 = vadd.f32 %v2298_v57, %v2092_v26  ;;  %v646_v59 = vpop.f32.mrb[11].mxu0 }
  0xfe   : > { %v647_v60 = vadd.f32 %v2092_v26, %v646_v59  ;;  %2319 = vmatprep.mubr.msk.f32.mxu1 %vm697_vm2, %v683_v56 }
  0xff   : > { %v686_v61 = vmax.f32 %v652_v58, 0.0  ;;  %2320 = vmatmul.mubr.msk.f32.gmra.mrb[2].mxu1 %vm697_vm2, %v684_v55 }
 0x100   : > { %v685_v62 = vmax.f32 %v647_v60, 0.0  ;;  %v2301_v63 = vpop.f32.mrb[12].mxu0 }
 0x101   : > { %v662_v0 = vadd.f32 %v2301_v63, %v2092_v26  ;;  %v656_v1 = vpop.f32.mrb[13].mxu0 }
 0x102   : > { %v657_v2 = vadd.f32 %v2092_v26, %v656_v1  ;;  %2322 = vmatprep.mubr.msk.f32.mxu1 %vm697_vm2, %v685_v62 }
 0x103   : > { %v688_v3 = vmax.f32 %v662_v0, 0.0  ;;  %2323 = vmatmul.mubr.msk.f32.gmra.mrb[4].mxu1 %vm697_vm2, %v686_v61 }
 0x104   : > { %v687_v4 = vmax.f32 %v657_v2, 0.0  ;;  %v2304_v5 = vpop.f32.mrb[14].mxu0 }
 0x105   : > { %v672_v6 = vadd.f32 %v2304_v5, %v2092_v26  ;;  %v666_v7 = vpop.f32.mrb[15].mxu0 }
 0x106   : > { %v667_v8 = vadd.f32 %v2092_v26, %v666_v7  ;;  %2325 = vmatprep.mubr.msk.f32.mxu1 %vm697_vm2, %v687_v4 }
 0x107   : > { %v690_v9 = vmax.f32 %v672_v6, 0.0  ;;  %2326 = vmatmul.mubr.msk.f32.gmra.mrb[6].mxu1 %vm697_vm2, %v688_v3 }
 0x108   : > { %v689_v10 = vmax.f32 %v667_v8, 0.0 }
 0x10a   : > { %2328 = vmatprep.mubr.msk.f32.mxu1 %vm697_vm2, %v689_v10 }
 0x10b   : > { %2329 = vmatmul.mubr.msk.f32.gmra.mrb[8].mxu1 %vm697_vm2, %v690_v9 }
 0x1c2   : > { %v2309_v16 = vpop.f32.mrb[16].mxu0 }
 0x1c3   : > { %v822_v17 = vadd.f32 %v2309_v16, %v2630_v15  ;;  %v816_v18 = vpop.f32.mrb[17].mxu0 }
 0x1c4   : > { %v817_v19 = vadd.f32 %v2630_v15, %v816_v18 }
 0x1c5   : > { %v896_v21 = vmax.f32 %v822_v17, 0.0 }
 0x1c6   : > { %v895_v22 = vmax.f32 %v817_v19, 0.0  ;;  %v2312_v23 = vpop.f32.mrb[18].mxu0 }
 0x1c7   : > { %v832_v25 = vadd.f32 %v2312_v23, %v2630_v15  ;;  %v826_v26 = vpop.f32.mrb[19].mxu0  ;;  %v918_v27 = vmul.f32 %v2634_v20, %v896_v21 }
 0x1c8   : > { %v917_v28 = vmul.f32 %v2634_v20, %v895_v22  ;;  %v827_v29 = vadd.f32 %v2630_v15, %v826_v26 }
 0x1c9   : > { %v898_v30 = vmax.f32 %v832_v25, 0.0  ;;  %v2648_v37 = vadd.f32 %v2636_v24, %v918_v27 }
 0x1ca   : > { %v897_v31 = vmax.f32 %v827_v29, 0.0  ;;  %v2315_v32 = vpop.f32.mrb[20].mxu0  ;;  %v2643_v33 = vadd.f32 %v2636_v24, %v917_v28 }
 0x1cb   : > { %v920_v34 = vmul.f32 %v2634_v20, %v898_v30  ;;  %v842_v35 = vadd.f32 %v2315_v32, %v2630_v15  ;;  %v836_v36 = vpop.f32.mrb[21].mxu0  ;;  %v959_v52 = vmax.f32 %v2648_v37, 0.0 }
 0x1cc   : > { %v919_v38 = vmul.f32 %v2634_v20, %v897_v31  ;;  %v837_v39 = vadd.f32 %v2630_v15, %v836_v36  ;;  %v958_v40 = vmax.f32 %v2643_v33, 0.0 }
 0x1cd   : > { %v900_v41 = vmax.f32 %v842_v35, 0.0  ;;  %v2657_v45 = vadd.f32 %v2636_v24, %v920_v34 }
 0x1ce   : > { %v899_v42 = vmax.f32 %v837_v39, 0.0  ;;  %v2318_v43 = vpop.f32.mrb[0].mxu1  ;;  %976 = vperm.xlu0 %2446, %v958_v40   ;;  %v2654_v44 = vadd.f32 %v2636_v24, %v919_v38 }
 0x1cf   : > { %v922_v46 = vmul.f32 %v2634_v20, %v900_v41  ;;  %v852_v47 = vadd.f32 %v2318_v43, %v2630_v15  ;;  %v846_v48 = vpop.f32.mrb[1].mxu1  ;;  %v961_v60 = vmax.f32 %v2657_v45, 0.0 }
 0x1d0   : > { %v921_v49 = vmul.f32 %v2634_v20, %v899_v42  ;;  %v847_v50 = vadd.f32 %v2630_v15, %v846_v48  ;;  %v960_v51 = vmax.f32 %v2654_v44, 0.0 }
 0x1d1   : > { %v902_v53 = vmax.f32 %v852_v47, 0.0  ;;  %v2669_v57 = vadd.f32 %v2636_v24, %v922_v46 }
 0x1d2   : > { %v2666_v54 = vadd.f32 %v2636_v24, %v921_v49  ;;  %v901_v55 = vmax.f32 %v847_v50, 0.0  ;;  %v2321_v56 = vpop.f32.mrb[2].mxu1  ;;  %986 = vperm.xlu1 %2447, %v960_v51   ;;  %981 = vperm.xlu0 %2446, %v959_v52  }
 0x1d3   : > { %v862_v58 = vadd.f32 %v2321_v56, %v2630_v15  ;;  %v856_v59 = vpop.f32.mrb[3].mxu1  ;;  %v924_v61 = vmul.f32 %v2634_v20, %v902_v53  ;;  %v963_v8 = vmax.f32 %v2669_v57, 0.0 }
 0x1d4   : > { %v923_v62 = vmul.f32 %v2634_v20, %v901_v55  ;;  %v857_v63 = vadd.f32 %v2630_v15, %v856_v59  ;;  %v962_v0 = vmax.f32 %v2666_v54, 0.0 }
 0x1d5   : > { %v904_v1 = vmax.f32 %v862_v58, 0.0  ;;  %v2684_v9 = vadd.f32 %v2636_v24, %v924_v61 }
 0x1d6   : > { %v2678_v2 = vadd.f32 %v2636_v24, %v923_v62  ;;  %v903_v3 = vmax.f32 %v857_v63, 0.0  ;;  %v2324_v4 = vpop.f32.mrb[4].mxu1  ;;  %991 = vperm.xlu1 %2447, %v961_v60   ;;  %996 = vperm.xlu0 %2446, %v962_v0  }
 0x1d7   : > { %v926_v5 = vmul.f32 %v2634_v20, %v904_v1  ;;  %v872_v6 = vadd.f32 %v2324_v4, %v2630_v15  ;;  %v866_v7 = vpop.f32.mrb[5].mxu1  ;;  %v965_v26 = vmax.f32 %v2684_v9, 0.0 }
 0x1d8   : > { %v925_v10 = vmul.f32 %v2634_v20, %v903_v3  ;;  %v867_v11 = vadd.f32 %v2630_v15, %v866_v7  ;;  %v964_v12 = vmax.f32 %v2678_v2, 0.0 }
 0x1d9   : > { %v906_v13 = vmax.f32 %v872_v6, 0.0  ;;  %v2693_v18 = vadd.f32 %v2636_v24, %v926_v5 }
 0x1da   : > { %v2690_v14 = vadd.f32 %v2636_v24, %v925_v10  ;;  %v905_v16 = vmax.f32 %v867_v11, 0.0  ;;  %v2327_v17 = vpop.f32.mrb[6].mxu1  ;;  %1001 = vperm.xlu1 %2447, %v963_v8   ;;  %1006 = vperm.xlu0 %2446, %v964_v12  }
 0x1db   : > { %v928_v19 = vmul.f32 %v2634_v20, %v906_v13  ;;  %v882_v21 = vadd.f32 %v2327_v17, %v2630_v15  ;;  %v876_v22 = vpop.f32.mrb[7].mxu1  ;;  %v967_v36 = vmax.f32 %v2693_v18, 0.0 }
 0x1dc   : > { %v927_v23 = vmul.f32 %v2634_v20, %v905_v16  ;;  %v877_v25 = vadd.f32 %v2630_v15, %v876_v22  ;;  %v966_v27 = vmax.f32 %v2690_v14, 0.0 }
 0x1dd   : > { %v908_v28 = vmax.f32 %v882_v21, 0.0  ;;  %v2705_v32 = vadd.f32 %v2636_v24, %v928_v19 }
 0x1de   : > { %v2702_v29 = vadd.f32 %v2636_v24, %v927_v23  ;;  %v907_v30 = vmax.f32 %v877_v25, 0.0  ;;  %v2330_v31 = vpop.f32.mrb[8].mxu1  ;;  %1011 = vperm.xlu1 %2447, %v965_v26   ;;  %1016 = vperm.xlu0 %2446, %v966_v27  }
 0x1df   : > { %v892_v34 = vadd.f32 %v2330_v31, %v2630_v15  ;;  %v886_v35 = vpop.f32.mrb[9].mxu1  ;;  %v930_v38 = vmul.f32 %v2634_v20, %v908_v28  ;;  %v969_v47 = vmax.f32 %v2705_v32, 0.0 }
 0x1e0   : > { %v929_v39 = vmul.f32 %v2634_v20, %v907_v30  ;;  %v887_v40 = vadd.f32 %v2630_v15, %v886_v35  ;;  %v968_v41 = vmax.f32 %v2702_v29, 0.0 }
 0x1e1   : > { %v910_v42 = vmax.f32 %v892_v34, 0.0  ;;  %v2718_v48 = vadd.f32 %v2636_v24, %v930_v38 }
 0x1e2   : > { %v2714_v43 = vadd.f32 %v2636_v24, %v929_v39  ;;  %v909_v46 = vmax.f32 %v887_v40, 0.0  ;;  %1021 = vperm.xlu1 %2447, %v967_v36   ;;  %1026 = vperm.xlu0 %2446, %v968_v41  }
 0x1e3   : > { %v932_v49 = vmul.f32 %v2634_v20, %v910_v42  ;;  %v971_v53 = vmax.f32 %v2718_v48, 0.0 }
 0x1e4   : > { %v931_v50 = vmul.f32 %v2634_v20, %v909_v46  ;;  %v970_v15 = vmax.f32 %v2714_v43, 0.0  ;;  %v2129_v20 = vld [vmem:[%s2992_s7] ss:$0 sm:$0xff] }
 0x1e5   : > { %v2727_v52 = vadd.f32 %v2636_v24, %v932_v49 }
 0x1e6   : > { %v2724_v51 = vadd.f32 %v2636_v24, %v931_v50  ;;  %1031 = vperm.xlu1 %2447, %v969_v47   ;;  %1036 = vperm.xlu0 %2446, %v970_v15  }
 0x1e7   : > { %v973_v56 = vmax.f32 %v2727_v52, 0.0 }
 0x1e8   : > { %v972_v55 = vmax.f32 %v2724_v51, 0.0 }
 0x1ea   : > { %1041 = vperm.xlu1 %2447, %v971_v53   ;;  %1046 = vperm.xlu0 %2446, %v972_v55  }
 0x1ee   : > { %1051 = vperm.xlu1 %2447, %v973_v56  }
 0x24d   : > { %v977_v58 = vpop.permute.xlu0 %976 }
 0x24e   : > { %v1060_v59 = vmul.f32 %v2129_v20, %v977_v58 }
 0x250   : > { %v1076_v60 = vmax.f32 %v1060_v59, 0.0  ;;  %v1303_v59 = vld [vmem:[%s2995_s10] sm:$0xff] }
 0x251   : > { %v987_v61 = vpop.permute.xlu1 %986  ;;  %v982_v24 = vpop.permute.xlu0 %981 }
 0x252   : > { %v1062_v62 = vmul.f32 %v2129_v20, %v987_v61  ;;  %v1061_v63 = vmul.f32 %v2129_v20, %v982_v24  ;;  %2335 = vmatprep.mubr.msk.f32.mxu1 %vm1092_vm3, %v1076_v60  ;;  %v1304_v60 = vld [vmem:[%s2995_s10 + $0x8] sm:$0xff] }
 0x253   : > { %v2427_v61 = vpack.c.bf16 %v1304_v60, %v1303_v59 }
 0x254   : > { %v1078_v0 = vmax.f32 %v1062_v62, 0.0  ;;  %v1077_v1 = vmax.f32 %v1061_v63, 0.0 }
 0x255   : > { %v992_v3 = vpop.permute.xlu1 %991  ;;  %v997_v4 = vpop.permute.xlu0 %996  ;;  %2428 = vmatprep.subr.bf16.mxu0 %v2427_v61 }
 0x256   : > { %v1063_v5 = vmul.f32 %v2129_v20, %v992_v3  ;;  %v1064_v6 = vmul.f32 %v2129_v20, %v997_v4  ;;  %2336 = vmatmul.mubr.msk.f32.vlgmr.msra.gmra.mrb[10].mxu1 %vm1092_vm3, %v1077_v1  ;;  %2430 = vmatpush3.bf16.msra.mxu0 %v2427_v61 }
 0x257   : > { %2338 = vmatprep.mubr.msk.f32.mxu1 %vm1092_vm3, %v1078_v0 }
 0x258   : > { %v1079_v7 = vmax.f32 %v1063_v5, 0.0  ;;  %v1080_v8 = vmax.f32 %v1064_v6, 0.0 }
 0x259   : > { %v1002_v10 = vpop.permute.xlu1 %1001  ;;  %v1007_v11 = vpop.permute.xlu0 %1006 }
 0x25a   : > { %v1065_v12 = vmul.f32 %v2129_v20, %v1002_v10  ;;  %v1066_v13 = vmul.f32 %v2129_v20, %v1007_v11  ;;  %2339 = vmatmul.mubr.msk.f32.gmra.mrb[12].mxu1 %vm1092_vm3, %v1079_v7 }
 0x25b   : > { %2341 = vmatprep.mubr.msk.f32.mxu1 %vm1092_vm3, %v1080_v8 }
 0x25c   : > { %v1081_v16 = vmax.f32 %v1065_v12, 0.0  ;;  %v1082_v17 = vmax.f32 %v1066_v13, 0.0 }
 0x25d   : > { %v1012_v19 = vpop.permute.xlu1 %1011  ;;  %v1017_v21 = vpop.permute.xlu0 %1016 }
 0x25e   : > { %v1067_v22 = vmul.f32 %v2129_v20, %v1012_v19  ;;  %v1068_v23 = vmul.f32 %v2129_v20, %v1017_v21  ;;  %2342 = vmatmul.mubr.msk.f32.gmra.mrb[14].mxu1 %vm1092_vm3, %v1081_v16 }
 0x25f   : > { %2344 = vmatprep.mubr.msk.f32.mxu1 %vm1092_vm3, %v1082_v17 }
 0x260   : > { %v1083_v25 = vmax.f32 %v1067_v22, 0.0  ;;  %v1084_v26 = vmax.f32 %v1068_v23, 0.0 }
 0x261   : > { %v1022_v27 = vpop.permute.xlu1 %1021  ;;  %v1027_v28 = vpop.permute.xlu0 %1026 }
 0x262   : > { %v1069_v30 = vmul.f32 %v2129_v20, %v1022_v27  ;;  %v1070_v31 = vmul.f32 %v2129_v20, %v1027_v28  ;;  %2345 = vmatmul.mubr.msk.f32.gmra.mrb[16].mxu1 %vm1092_vm3, %v1083_v25 }
 0x263   : > { %2347 = vmatprep.mubr.msk.f32.mxu1 %vm1092_vm3, %v1084_v26 }
 0x264   : > { %v1085_v34 = vmax.f32 %v1069_v30, 0.0  ;;  %v1086_v35 = vmax.f32 %v1070_v31, 0.0 }
 0x265   : > { %v1032_v36 = vpop.permute.xlu1 %1031  ;;  %v1037_v38 = vpop.permute.xlu0 %1036 }
 0x266   : > { %v1071_v39 = vmul.f32 %v2129_v20, %v1032_v36  ;;  %v1072_v40 = vmul.f32 %v2129_v20, %v1037_v38  ;;  %2348 = vmatmul.mubr.msk.f32.gmra.mrb[18].mxu1 %vm1092_vm3, %v1085_v34 }
 0x267   : > { %2350 = vmatprep.mubr.msk.f32.mxu1 %vm1092_vm3, %v1086_v35 }
 0x268   : > { %v1087_v41 = vmax.f32 %v1071_v39, 0.0  ;;  %v1088_v42 = vmax.f32 %v1072_v40, 0.0 }
 0x269   : > { %v1042_v46 = vpop.permute.xlu1 %1041  ;;  %v1047_v47 = vpop.permute.xlu0 %1046 }
 0x26a   : > { %v1073_v49 = vmul.f32 %v2129_v20, %v1042_v46  ;;  %v1074_v50 = vmul.f32 %v2129_v20, %v1047_v47  ;;  %2351 = vmatmul.mubr.msk.f32.gmra.mrb[20].mxu1 %vm1092_vm3, %v1087_v41  ;;  %v2146_v41 = vld [vmem:[%s2994_s9] ss:$0 sm:$0xff] }
 0x26b   : > { %2353 = vmatprep.mubr.msk.f32.mxu1 %vm1092_vm3, %v1088_v42 }
 0x26c   : > { %v1089_v15 = vmax.f32 %v1073_v49, 0.0  ;;  %v1090_v53 = vmax.f32 %v1074_v50, 0.0 }
 0x26d   : > { %v1052_v55 = vpop.permute.xlu1 %1051 }
 0x26e   : > { %v1075_v56 = vmul.f32 %v2129_v20, %v1052_v55  ;;  %2354 = vmatmul.mubr.msk.f32.gmra.mrb[22].mxu1 %vm1092_vm3, %v1089_v15 }
 0x26f   : > { %2356 = vmatprep.mubr.msk.f32.mxu1 %vm1092_vm3, %v1090_v53 }
 0x270   : > { %v1091_v58 = vmax.f32 %v1075_v56, 0.0 }
 0x272   : > { %2357 = vmatmul.mubr.msk.f32.gmra.mrb[24].mxu1 %vm1092_vm3, %v1091_v58 }
 0x329   : > { %v2337_v24 = vpop.f32.mrb[10].mxu1 }
 0x32a   : > { %v2758_v20 = vadd.f32 %v2337_v24, %v2648_v37  ;;  %v1207_v62 = vpop.f32.mrb[11].mxu1 }
 0x32b   : > { %v2761_v63 = vadd.f32 %v1207_v62, %v2643_v33 }
 0x32c   : > { %v1306_v0 = vmax.f32 %v2758_v20, 0.0 }
 0x32d   : > { %v1305_v1 = vmax.f32 %v2761_v63, 0.0  ;;  %v2340_v3 = vpop.f32.mrb[12].mxu1 }
 0x32e   : > { %v2766_v4 = vadd.f32 %v2340_v3, %v2657_v45  ;;  %1328 = vperm.xlu1 %2447, %v1306_v0   ;;  %v1217_v5 = vpop.f32.mrb[13].mxu1 }
 0x32f   : > { %v2769_v6 = vadd.f32 %v1217_v5, %v2654_v44  ;;  %1323 = vperm.xlu0 %2446, %v1305_v1  }
 0x330   : > { %v1308_v37 = vmax.f32 %v2766_v4, 0.0 }
 0x331   : > { %v1307_v7 = vmax.f32 %v2769_v6, 0.0  ;;  %v2343_v33 = vpop.f32.mrb[14].mxu1 }
 0x332   : > { %v2774_v8 = vadd.f32 %v2343_v33, %v2669_v57  ;;  %1338 = vperm.xlu1 %2447, %v1308_v37   ;;  %v1227_v10 = vpop.f32.mrb[15].mxu1 }
 0x333   : > { %v2777_v11 = vadd.f32 %v1227_v10, %v2666_v54  ;;  %1333 = vperm.xlu0 %2446, %v1307_v7  }
 0x334   : > { %v1310_v45 = vmax.f32 %v2774_v8, 0.0 }
 0x335   : > { %v1309_v44 = vmax.f32 %v2777_v11, 0.0  ;;  %v2346_v12 = vpop.f32.mrb[16].mxu1 }
 0x336   : > { %v2782_v13 = vadd.f32 %v2346_v12, %v2684_v9  ;;  %1348 = vperm.xlu1 %2447, %v1310_v45   ;;  %v1237_v16 = vpop.f32.mrb[17].mxu1 }
 0x337   : > { %v2785_v17 = vadd.f32 %v1237_v16, %v2678_v2  ;;  %1343 = vperm.xlu0 %2446, %v1309_v44  }
 0x338   : > { %v1312_v57 = vmax.f32 %v2782_v13, 0.0 }
 0x339   : > { %v1311_v54 = vmax.f32 %v2785_v17, 0.0  ;;  %v2349_v19 = vpop.f32.mrb[18].mxu1 }
 0x33a   : > { %v2790_v21 = vadd.f32 %v2349_v19, %v2693_v18  ;;  %1358 = vperm.xlu1 %2447, %v1312_v57   ;;  %v1247_v22 = vpop.f32.mrb[19].mxu1 }
 0x33b   : > { %v2793_v23 = vadd.f32 %v1247_v22, %v2690_v14  ;;  %1353 = vperm.xlu0 %2446, %v1311_v54  }
 0x33c   : > { %v1314_v9 = vmax.f32 %v2790_v21, 0.0 }
 0x33d   : > { %v1313_v2 = vmax.f32 %v2793_v23, 0.0  ;;  %v2352_v25 = vpop.f32.mrb[20].mxu1 }
 0x33e   : > { %v2798_v26 = vadd.f32 %v2352_v25, %v2705_v32  ;;  %1368 = vperm.xlu1 %2447, %v1314_v9   ;;  %v1257_v27 = vpop.f32.mrb[21].mxu1 }
 0x33f   : > { %v2801_v28 = vadd.f32 %v1257_v27, %v2702_v29  ;;  %1363 = vperm.xlu0 %2446, %v1313_v2  }
 0x340   : > { %v1316_v18 = vmax.f32 %v2798_v26, 0.0 }
 0x341   : > { %v1315_v14 = vmax.f32 %v2801_v28, 0.0  ;;  %v2355_v30 = vpop.f32.mrb[22].mxu1 }
 0x342   : > { %v2806_v31 = vadd.f32 %v2355_v30, %v2718_v48  ;;  %1378 = vperm.xlu1 %2447, %v1316_v18   ;;  %v1267_v34 = vpop.f32.mrb[23].mxu1 }
 0x343   : > { %v2809_v35 = vadd.f32 %v1267_v34, %v2714_v43  ;;  %1373 = vperm.xlu0 %2446, %v1315_v14  }
 0x344   : > { %v1318_v32 = vmax.f32 %v2806_v31, 0.0 }
 0x345   : > { %v1317_v29 = vmax.f32 %v2809_v35, 0.0  ;;  %v2358_v36 = vpop.f32.mrb[24].mxu1 }
 0x346   : > { %v2814_v38 = vadd.f32 %v2358_v36, %v2727_v52  ;;  %1388 = vperm.xlu1 %2447, %v1318_v32   ;;  %v1277_v39 = vpop.f32.mrb[25].mxu1 }
 0x347   : > { %v2817_v40 = vadd.f32 %v1277_v39, %v2724_v51  ;;  %1383 = vperm.xlu0 %2446, %v1317_v29  }
 0x348   : > { %v1320_v48 = vmax.f32 %v2814_v38, 0.0 }
 0x349   : > { %v1319_v43 = vmax.f32 %v2817_v40, 0.0 }
 0x34a   : > { %1398 = vperm.xlu1 %2447, %v1320_v48  }
 0x34b   : > { %1393 = vperm.xlu0 %2446, %v1319_v43  }
 0x3ad   : > { %v1329_v42 = vpop.permute.xlu1 %1328 }
 0x3ae   : > { %v1408_v46 = vmul.f32 %v2146_v41, %v1329_v42  ;;  %v1324_v52 = vpop.permute.xlu0 %1323 }
 0x3af   : > { %v1407_v47 = vmul.f32 %v2146_v41, %v1324_v52  ;;  %v1650_v52 = vld [vmem:[%s2997_s12 + $0x8] sm:$0xff] }
 0x3b0   : > { %v1424_v15 = vmax.f32 %v1408_v46, 0.0  ;;  %v1649_v46 = vld [vmem:[%s2997_s12] sm:$0xff] }
 0x3b1   : > { %v1423_v49 = vmax.f32 %v1407_v47, 0.0  ;;  %v1339_v50 = vpop.permute.xlu1 %1338  ;;  %v2431_v47 = vpack.c.bf16 %v1650_v52, %v1649_v46 }
 0x3b2   : > { %v1410_v51 = vmul.f32 %v2146_v41, %v1339_v50  ;;  %v1334_v53 = vpop.permute.xlu0 %1333 }
 0x3b3   : > { %v1409_v55 = vmul.f32 %v2146_v41, %v1334_v53  ;;  %2363 = vmatprep.mubr.msk.f32.mxu0 %vm1092_vm3, %v1423_v49  ;;  %2432 = vmatprep.subr.bf16.mxu1 %v2431_v47 }
 0x3b4   : > { %2364 = vmatmul.mubr.msk.f32.vlgmr.msra.gmra.mrb[22].mxu0 %vm1092_vm3, %v1424_v15  ;;  %v1426_v59 = vmax.f32 %v1410_v51, 0.0  ;;  %2434 = vmatpush3.bf16.msra.mxu1 %v2431_v47 }
 0x3b5   : > { %v1425_v56 = vmax.f32 %v1409_v55, 0.0  ;;  %v1349_v58 = vpop.permute.xlu1 %1348 }
 0x3b6   : > { %v1412_v60 = vmul.f32 %v2146_v41, %v1349_v58  ;;  %v1344_v61 = vpop.permute.xlu0 %1343 }
 0x3b7   : > { %v1411_v24 = vmul.f32 %v2146_v41, %v1344_v61  ;;  %2366 = vmatprep.mubr.msk.f32.mxu0 %vm1092_vm3, %v1425_v56 }
 0x3b8   : > { %2367 = vmatmul.mubr.msk.f32.gmra.mrb[24].mxu0 %vm1092_vm3, %v1426_v59  ;;  %v1428_v1 = vmax.f32 %v1412_v60, 0.0 }
 0x3b9   : > { %v1427_v62 = vmax.f32 %v1411_v24, 0.0  ;;  %v1359_v0 = vpop.permute.xlu1 %1358 }
 0x3ba   : > { %v1414_v3 = vmul.f32 %v2146_v41, %v1359_v0  ;;  %v1354_v5 = vpop.permute.xlu0 %1353 }
 0x3bb   : > { %v1413_v37 = vmul.f32 %v2146_v41, %v1354_v5  ;;  %2369 = vmatprep.mubr.msk.f32.mxu0 %vm1092_vm3, %v1427_v62 }
 0x3bc   : > { %2370 = vmatmul.mubr.msk.f32.gmra.mrb[26].mxu0 %vm1092_vm3, %v1428_v1  ;;  %v1430_v10 = vmax.f32 %v1414_v3, 0.0 }
 0x3bd   : > { %v1429_v7 = vmax.f32 %v1413_v37, 0.0  ;;  %v1369_v33 = vpop.permute.xlu1 %1368 }
 0x3be   : > { %v1416_v45 = vmul.f32 %v2146_v41, %v1369_v33  ;;  %v1364_v44 = vpop.permute.xlu0 %1363 }
 0x3bf   : > { %v1415_v12 = vmul.f32 %v2146_v41, %v1364_v44  ;;  %2372 = vmatprep.mubr.msk.f32.mxu0 %vm1092_vm3, %v1429_v7 }
 0x3c0   : > { %2373 = vmatmul.mubr.msk.f32.gmra.mrb[28].mxu0 %vm1092_vm3, %v1430_v10  ;;  %v1432_v54 = vmax.f32 %v1416_v45, 0.0 }
 0x3c1   : > { %v1431_v16 = vmax.f32 %v1415_v12, 0.0  ;;  %v1379_v57 = vpop.permute.xlu1 %1378 }
 0x3c2   : > { %v1418_v19 = vmul.f32 %v2146_v41, %v1379_v57  ;;  %v1374_v22 = vpop.permute.xlu0 %1373 }
 0x3c3   : > { %v1417_v9 = vmul.f32 %v2146_v41, %v1374_v22  ;;  %2375 = vmatprep.mubr.msk.f32.mxu0 %vm1092_vm3, %v1431_v16 }
 0x3c4   : > { %2376 = vmatmul.mubr.msk.f32.gmra.mrb[30].mxu0 %vm1092_vm3, %v1432_v54  ;;  %v1434_v27 = vmax.f32 %v1418_v19, 0.0 }
 0x3c5   : > { %v1433_v2 = vmax.f32 %v1417_v9, 0.0  ;;  %v1389_v25 = vpop.permute.xlu1 %1388 }
 0x3c6   : > { %v1420_v18 = vmul.f32 %v2146_v41, %v1389_v25  ;;  %v1384_v14 = vpop.permute.xlu0 %1383 }
 0x3c7   : > { %v1419_v30 = vmul.f32 %v2146_v41, %v1384_v14  ;;  %2378 = vmatprep.mubr.msk.f32.mxu0 %vm1092_vm3, %v1433_v2 }
 0x3c8   : > { %2379 = vmatmul.mubr.msk.f32.gmra.mrb[32].mxu0 %vm1092_vm3, %v1434_v27  ;;  %v1436_v29 = vmax.f32 %v1420_v18, 0.0  ;;  %v2163_v18 = vld [vmem:[%s2996_s11] ss:$0 sm:$0xff] }
 0x3c9   : > { %v1435_v34 = vmax.f32 %v1419_v30, 0.0  ;;  %v1399_v32 = vpop.permute.xlu1 %1398 }
 0x3ca   : > { %v1422_v36 = vmul.f32 %v2146_v41, %v1399_v32  ;;  %v1394_v39 = vpop.permute.xlu0 %1393 }
 0x3cb   : > { %v1421_v48 = vmul.f32 %v2146_v41, %v1394_v39  ;;  %2381 = vmatprep.mubr.msk.f32.mxu0 %vm1092_vm3, %v1435_v34 }
 0x3cc   : > { %2382 = vmatmul.mubr.msk.f32.gmra.mrb[34].mxu0 %vm1092_vm3, %v1436_v29  ;;  %v1438_v42 = vmax.f32 %v1422_v36, 0.0 }
 0x3cd   : > { %v1437_v43 = vmax.f32 %v1421_v48, 0.0 }
 0x3cf   : > { %2384 = vmatprep.mubr.msk.f32.mxu0 %vm1092_vm3, %v1437_v43 }
 0x3d0   : > { %2385 = vmatmul.mubr.msk.f32.gmra.mrb[36].mxu0 %vm1092_vm3, %v1438_v42 }
 0x487   : > { %v2365_v41 = vpop.f32.mrb[22].mxu0 }
 0x488   : > { %v2847_v49 = vadd.f32 %v2365_v41, %v2758_v20  ;;  %v1553_v50 = vpop.f32.mrb[23].mxu0 }
 0x489   : > { %v2850_v15 = vadd.f32 %v1553_v50, %v2761_v63 }
 0x48a   : > { %v1652_v51 = vmax.f32 %v2847_v49, 0.0 }
 0x48b   : > { %v1651_v53 = vmax.f32 %v2850_v15, 0.0  ;;  %v2368_v55 = vpop.f32.mrb[24].mxu0 }
 0x48c   : > { %v2855_v56 = vadd.f32 %v2368_v55, %v2766_v4  ;;  %1674 = vperm.xlu1 %2447, %v1652_v51   ;;  %v1563_v58 = vpop.f32.mrb[25].mxu0 }
 0x48d   : > { %v2858_v59 = vadd.f32 %v1563_v58, %v2769_v6  ;;  %1669 = vperm.xlu0 %2446, %v1651_v53  }
 0x48e   : > { %v1654_v20 = vmax.f32 %v2855_v56, 0.0 }
 0x48f   : > { %v1653_v60 = vmax.f32 %v2858_v59, 0.0  ;;  %v2371_v63 = vpop.f32.mrb[26].mxu0 }
 0x490   : > { %v2863_v61 = vadd.f32 %v2371_v63, %v2774_v8  ;;  %1684 = vperm.xlu1 %2447, %v1654_v20   ;;  %v1573_v24 = vpop.f32.mrb[27].mxu0 }
 0x491   : > { %v2866_v62 = vadd.f32 %v1573_v24, %v2777_v11  ;;  %1679 = vperm.xlu0 %2446, %v1653_v60  }
 0x492   : > { %v1656_v4 = vmax.f32 %v2863_v61, 0.0 }
 0x493   : > { %v1655_v6 = vmax.f32 %v2866_v62, 0.0  ;;  %v2374_v0 = vpop.f32.mrb[28].mxu0 }
 0x494   : > { %v2871_v1 = vadd.f32 %v2374_v0, %v2782_v13  ;;  %1694 = vperm.xlu1 %2447, %v1656_v4   ;;  %v1583_v3 = vpop.f32.mrb[29].mxu0 }
 0x495   : > { %v2874_v5 = vadd.f32 %v1583_v3, %v2785_v17  ;;  %1689 = vperm.xlu0 %2446, %v1655_v6  }
 0x496   : > { %v1658_v8 = vmax.f32 %v2871_v1, 0.0 }
 0x497   : > { %v1657_v11 = vmax.f32 %v2874_v5, 0.0  ;;  %v2377_v37 = vpop.f32.mrb[30].mxu0 }
 0x498   : > { %v2879_v7 = vadd.f32 %v2377_v37, %v2790_v21  ;;  %1704 = vperm.xlu1 %2447, %v1658_v8   ;;  %v1593_v33 = vpop.f32.mrb[31].mxu0 }
 0x499   : > { %v2882_v10 = vadd.f32 %v1593_v33, %v2793_v23  ;;  %1699 = vperm.xlu0 %2446, %v1657_v11  }
 0x49a   : > { %v1660_v13 = vmax.f32 %v2879_v7, 0.0 }
 0x49b   : > { %v1659_v17 = vmax.f32 %v2882_v10, 0.0  ;;  %v2380_v45 = vpop.f32.mrb[32].mxu0 }
 0x49c   : > { %v2887_v44 = vadd.f32 %v2380_v45, %v2798_v26  ;;  %1714 = vperm.xlu1 %2447, %v1660_v13   ;;  %v1603_v12 = vpop.f32.mrb[33].mxu0 }
 0x49d   : > { %v2890_v16 = vadd.f32 %v1603_v12, %v2801_v28  ;;  %1709 = vperm.xlu0 %2446, %v1659_v17  }
 0x49e   : > { %v1662_v21 = vmax.f32 %v2887_v44, 0.0 }
 0x49f   : > { %v1661_v23 = vmax.f32 %v2890_v16, 0.0  ;;  %v2383_v57 = vpop.f32.mrb[34].mxu0 }
 0x4a0   : > { %v2895_v54 = vadd.f32 %v2383_v57, %v2806_v31  ;;  %1724 = vperm.xlu1 %2447, %v1662_v21   ;;  %v1613_v19 = vpop.f32.mrb[35].mxu0 }
 0x4a1   : > { %v2898_v22 = vadd.f32 %v1613_v19, %v2809_v35  ;;  %1719 = vperm.xlu0 %2446, %v1661_v23  }
 0x4a2   : > { %v1664_v26 = vmax.f32 %v2895_v54, 0.0 }
 0x4a3   : > { %v1663_v28 = vmax.f32 %v2898_v22, 0.0  ;;  %v2386_v9 = vpop.f32.mrb[36].mxu0 }
 0x4a4   : > { %v2903_v2 = vadd.f32 %v2386_v9, %v2814_v38  ;;  %1734 = vperm.xlu1 %2447, %v1664_v26   ;;  %v1623_v25 = vpop.f32.mrb[37].mxu0 }
 0x4a5   : > { %v2906_v27 = vadd.f32 %v1623_v25, %v2817_v40  ;;  %1729 = vperm.xlu0 %2446, %v1663_v28  }
 0x4a6   : > { %v1666_v31 = vmax.f32 %v2903_v2, 0.0 }
 0x4a7   : > { %v1665_v35 = vmax.f32 %v2906_v27, 0.0 }
 0x4a8   : > { %1744 = vperm.xlu1 %2447, %v1666_v31  }
 0x4a9   : > { %1739 = vperm.xlu0 %2446, %v1665_v35  }
 0x50b   : > { %v1675_v14 = vpop.permute.xlu1 %1674 }
 0x50c   : > { %v1754_v30 = vmul.f32 %v2163_v18, %v1675_v14  ;;  %v1670_v38 = vpop.permute.xlu0 %1669 }
 0x50d   : > { %v1753_v34 = vmul.f32 %v2163_v18, %v1670_v38 }
 0x50e   : > { %v1770_v36 = vmax.f32 %v1754_v30, 0.0 }
 0x50f   : > { %v1769_v32 = vmax.f32 %v1753_v34, 0.0  ;;  %v1685_v29 = vpop.permute.xlu1 %1684 }
 0x510   : > { %v1756_v40 = vmul.f32 %v2163_v18, %v1685_v29  ;;  %v1680_v39 = vpop.permute.xlu0 %1679 }
 0x511   : > { %v1755_v48 = vmul.f32 %v2163_v18, %v1680_v39  ;;  %2391 = vmatprep.mubr.msk.f32.mxu1 %vm1092_vm3, %v1769_v32 }
 0x512   : > { %2392 = vmatmul.mubr.msk.f32.vlgmr.msra.gmra.mrb[26].mxu1 %vm1092_vm3, %v1770_v36  ;;  %v1772_v46 = vmax.f32 %v1756_v40, 0.0 }
 0x513   : > { %v1771_v43 = vmax.f32 %v1755_v48, 0.0  ;;  %v1695_v42 = vpop.permute.xlu1 %1694 }
 0x514   : > { %v1758_v52 = vmul.f32 %v2163_v18, %v1695_v42  ;;  %v1690_v47 = vpop.permute.xlu0 %1689 }
 0x515   : > { %v1757_v41 = vmul.f32 %v2163_v18, %v1690_v47  ;;  %2394 = vmatprep.mubr.msk.f32.mxu1 %vm1092_vm3, %v1771_v43 }
 0x516   : > { %2395 = vmatmul.mubr.msk.f32.gmra.mrb[28].mxu1 %vm1092_vm3, %v1772_v46  ;;  %v1774_v53 = vmax.f32 %v1758_v52, 0.0 }
 0x517   : > { %v1773_v50 = vmax.f32 %v1757_v41, 0.0  ;;  %v1705_v51 = vpop.permute.xlu1 %1704 }
 0x518   : > { %v1760_v55 = vmul.f32 %v2163_v18, %v1705_v51  ;;  %v1700_v58 = vpop.permute.xlu0 %1699 }
 0x519   : > { %v1759_v20 = vmul.f32 %v2163_v18, %v1700_v58  ;;  %2397 = vmatprep.mubr.msk.f32.mxu1 %vm1092_vm3, %v1773_v50 }
 0x51a   : > { %2398 = vmatmul.mubr.msk.f32.gmra.mrb[30].mxu1 %vm1092_vm3, %v1774_v53  ;;  %v1776_v24 = vmax.f32 %v1760_v55, 0.0 }
 0x51b   : > { %v1775_v60 = vmax.f32 %v1759_v20, 0.0  ;;  %v1715_v63 = vpop.permute.xlu1 %1714 }
 0x51c   : > { %v1762_v4 = vmul.f32 %v2163_v18, %v1715_v63  ;;  %v1710_v6 = vpop.permute.xlu0 %1709 }
 0x51d   : > { %v1761_v0 = vmul.f32 %v2163_v18, %v1710_v6  ;;  %2400 = vmatprep.mubr.msk.f32.mxu1 %vm1092_vm3, %v1775_v60 }
 0x51e   : > { %2401 = vmatmul.mubr.msk.f32.gmra.mrb[32].mxu1 %vm1092_vm3, %v1776_v24  ;;  %v1778_v11 = vmax.f32 %v1762_v4, 0.0 }
 0x51f   : > { %v1777_v3 = vmax.f32 %v1761_v0, 0.0  ;;  %v1725_v8 = vpop.permute.xlu1 %1724 }
 0x520   : > { %v1764_v37 = vmul.f32 %v2163_v18, %v1725_v8  ;;  %v1720_v33 = vpop.permute.xlu0 %1719 }
 0x521   : > { %v1763_v13 = vmul.f32 %v2163_v18, %v1720_v33  ;;  %2403 = vmatprep.mubr.msk.f32.mxu1 %vm1092_vm3, %v1777_v3 }
 0x522   : > { %2404 = vmatmul.mubr.msk.f32.gmra.mrb[34].mxu1 %vm1092_vm3, %v1778_v11  ;;  %v1780_v12 = vmax.f32 %v1764_v37, 0.0 }
 0x523   : > { %v1779_v17 = vmax.f32 %v1763_v13, 0.0  ;;  %v1735_v45 = vpop.permute.xlu1 %1734 }
 0x524   : > { %v1766_v21 = vmul.f32 %v2163_v18, %v1735_v45  ;;  %v1730_v23 = vpop.permute.xlu0 %1729 }
 0x525   : > { %v1765_v57 = vmul.f32 %v2163_v18, %v1730_v23  ;;  %2406 = vmatprep.mubr.msk.f32.mxu1 %vm1092_vm3, %v1779_v17 }
 0x526   : > { %2407 = vmatmul.mubr.msk.f32.gmra.mrb[36].mxu1 %vm1092_vm3, %v1780_v12  ;;  %v1782_v28 = vmax.f32 %v1766_v21, 0.0 }
 0x527   : > { %v1781_v19 = vmax.f32 %v1765_v57, 0.0  ;;  %v1745_v26 = vpop.permute.xlu1 %1744 }
 0x528   : > { %v1768_v9 = vmul.f32 %v2163_v18, %v1745_v26  ;;  %v1740_v25 = vpop.permute.xlu0 %1739 }
 0x529   : > { %v1767_v31 = vmul.f32 %v2163_v18, %v1740_v25  ;;  %2409 = vmatprep.mubr.msk.f32.mxu1 %vm1092_vm3, %v1781_v19 }
 0x52a   : > { %2410 = vmatmul.mubr.msk.f32.gmra.mrb[38].mxu1 %vm1092_vm3, %v1782_v28  ;;  %v1784_v14 = vmax.f32 %v1768_v9, 0.0 }
 0x52b   : > { %v1783_v35 = vmax.f32 %v1767_v31, 0.0 }
 0x52d   : > { %2412 = vmatprep.mubr.msk.f32.mxu1 %vm1092_vm3, %v1783_v35 }
 0x52e   : > { %2413 = vmatmul.mubr.msk.f32.gmra.mrb[40].mxu1 %vm1092_vm3, %v1784_v14 }
 0x5e5   : > { %v2393_v30 = vpop.f32.mrb[26].mxu1 }
 0x5e6   : > { %v1979_v38 = vadd.f32 %v2393_v30, %v2847_v49  ;;  %v1899_v34 = vpop.f32.mrb[27].mxu1 }
 0x5e7   : > { %v1978_v18 = vadd.f32 %v1899_v34, %v2850_v15 }
 0x5e8   : > { %v1995_v32 = vmax.f32 %v1979_v38, 0.0 }
 0x5e9   : > { %v1994_v29 = vmax.f32 %v1978_v18, 0.0  ;;  %v2396_v36 = vpop.f32.mrb[28].mxu1 }
 0x5ea   : > { %2012 = vst.msk [vmem:[%s2935_s6 + $0x8] sm:$0xff] %vm2010_vm4, %v1995_v32  ;;  %v1981_v49 = vadd.f32 %v2396_v36, %v2855_v56  ;;  %v1909_v40 = vpop.f32.mrb[29].mxu1 }
 0x5eb   : > { %2011 = vst.msk [vmem:[%s2935_s6] sm:$0xff] %vm2010_vm4, %v1994_v29  ;;  %v1980_v39 = vadd.f32 %v1909_v40, %v2858_v59 }
 0x5ec   : > { %v1997_v48 = vmax.f32 %v1981_v49, 0.0 }
 0x5ed   : > { %v1996_v43 = vmax.f32 %v1980_v39, 0.0  ;;  %v2399_v42 = vpop.f32.mrb[30].mxu1 }
 0x5ee   : > { %2014 = vst.msk [vmem:[%s2935_s6 + $0x18] sm:$0xff] %vm2010_vm4, %v1997_v48  ;;  %v1983_v15 = vadd.f32 %v2399_v42, %v2863_v61  ;;  %v1919_v46 = vpop.f32.mrb[31].mxu1 }
 0x5ef   : > { %2013 = vst.msk [vmem:[%s2935_s6 + $0x10] sm:$0xff] %vm2010_vm4, %v1996_v43  ;;  %v1982_v56 = vadd.f32 %v1919_v46, %v2866_v62 }
 0x5f0   : > { %v1999_v52 = vmax.f32 %v1983_v15, 0.0 }
 0x5f1   : > { %v1998_v47 = vmax.f32 %v1982_v56, 0.0  ;;  %v2402_v41 = vpop.f32.mrb[32].mxu1 }
 0x5f2   : > { %2016 = vst.msk [vmem:[%s2935_s6 + $0x28] sm:$0xff] %vm2010_vm4, %v1999_v52  ;;  %v1985_v59 = vadd.f32 %v2402_v41, %v2871_v1  ;;  %v1929_v50 = vpop.f32.mrb[33].mxu1 }
 0x5f3   : > { %2015 = vst.msk [vmem:[%s2935_s6 + $0x20] sm:$0xff] %vm2010_vm4, %v1998_v47  ;;  %v1984_v61 = vadd.f32 %v1929_v50, %v2874_v5 }
 0x5f4   : > { %v2001_v51 = vmax.f32 %v1985_v59, 0.0 }
 0x5f5   : > { %v2000_v53 = vmax.f32 %v1984_v61, 0.0  ;;  %v2405_v55 = vpop.f32.mrb[34].mxu1 }
 0x5f6   : > { %2018 = vst.msk [vmem:[%s2935_s6 + $0x38] sm:$0xff] %vm2010_vm4, %v2001_v51  ;;  %v1987_v62 = vadd.f32 %v2405_v55, %v2879_v7  ;;  %v1939_v58 = vpop.f32.mrb[35].mxu1 }
 0x5f7   : > { %2017 = vst.msk [vmem:[%s2935_s6 + $0x30] sm:$0xff] %vm2010_vm4, %v2000_v53  ;;  %v1986_v1 = vadd.f32 %v1939_v58, %v2882_v10 }
 0x5f8   : > { %v2003_v20 = vmax.f32 %v1987_v62, 0.0 }
 0x5f9   : > { %v2002_v60 = vmax.f32 %v1986_v1, 0.0  ;;  %v2408_v63 = vpop.f32.mrb[36].mxu1 }
 0x5fa   : > { %2020 = vst.msk [vmem:[%s2935_s6 + $0x48] sm:$0xff] %vm2010_vm4, %v2003_v20  ;;  %v1989_v5 = vadd.f32 %v2408_v63, %v2887_v44  ;;  %v1949_v24 = vpop.f32.mrb[37].mxu1 }
 0x5fb   : > { %2019 = vst.msk [vmem:[%s2935_s6 + $0x40] sm:$0xff] %vm2010_vm4, %v2002_v60  ;;  %v1988_v7 = vadd.f32 %v1949_v24, %v2890_v16 }
 0x5fc   : > { %v2005_v4 = vmax.f32 %v1989_v5, 0.0 }
 0x5fd   : > { %v2004_v6 = vmax.f32 %v1988_v7, 0.0  ;;  %v2411_v0 = vpop.f32.mrb[38].mxu1 }
 0x5fe   : > { %2022 = vst.msk [vmem:[%s2935_s6 + $0x58] sm:$0xff] %vm2010_vm4, %v2005_v4  ;;  %v1991_v10 = vadd.f32 %v2411_v0, %v2895_v54  ;;  %v1959_v3 = vpop.f32.mrb[39].mxu1 }
 0x5ff   : > { %2021 = vst.msk [vmem:[%s2935_s6 + $0x50] sm:$0xff] %vm2010_vm4, %v2004_v6  ;;  %v1990_v44 = vadd.f32 %v1959_v3, %v2898_v22 }
 0x600   : > { %v2007_v8 = vmax.f32 %v1991_v10, 0.0 }
 0x601   : > { %v2006_v11 = vmax.f32 %v1990_v44, 0.0  ;;  %v2414_v37 = vpop.f32.mrb[40].mxu1 }
 0x602   : > { %2024 = vst.msk [vmem:[%s2935_s6 + $0x68] sm:$0xff] %vm2010_vm4, %v2007_v8  ;;  %v1993_v16 = vadd.f32 %v2414_v37, %v2903_v2  ;;  %v1969_v33 = vpop.f32.mrb[41].mxu1 }
 0x603   : > { %2023 = vst.msk [vmem:[%s2935_s6 + $0x60] sm:$0xff] %vm2010_vm4, %v2006_v11  ;;  %v1992_v13 = vadd.f32 %v1969_v33, %v2906_v27 }
 0x604   : > { %v2009_v17 = vmax.f32 %v1993_v16, 0.0 }
 0x605   : > { %v2008_v45 = vmax.f32 %v1992_v13, 0.0 }
 0x606   : > { %2026 = vst.msk [vmem:[%s2935_s6 + $0x78] sm:$0xff] %vm2010_vm4, %v2009_v17 }
 0x607   : > { %2025 = vst.msk [vmem:[%s2935_s6 + $0x70] sm:$0xff] %vm2010_vm4, %v2008_v45 }
 0x608 PF: > { %s29_s14 = sadd.s32 1, %s2454_s14  }
 0x609   : > { %p26_p4 = scmp.ge.s32.totalorder %s29_s14, 4  }
 0x60b   :  { %28 = sbr.rel (!%p26_p4) target bundleno = 4 (0x4), region = 102 }

</bundles_post_ra>
